<compile_context>
chip_gen: v5e
topology: v5e:2x2
jax: 0.10.0
libtpu: 0.0.40
codegen_flags: <defaults>
</compile_context>

<pallas_src>
import functools

import jax
import jax.numpy as jnp
from jax.experimental import pallas as pl
from jax.experimental.pallas import tpu as pltpu


def _round_up(x, m):
    return ((x + m - 1) // m) * m


def _my_sigmoid(x):
    # clamp-at-±6 sigmoid (semantics of MySigmoid per the commented reference code).
    # Pre-clamp the exponent argument so exp never overflows (cheaper/safer, same values).
    xc = jnp.clip(x, -30.0, 30.0)
    s = 1.0 / (1.0 + jnp.exp(-xc))
    s = jnp.where(x > 6.0, 1.0, s)
    return jnp.where(x > -6.0, s, 0.0)


def cbow_kernel(emb0_hbm, emb1_hbm, ints_ref, flts_ref, out_ref, emb0_v, emb1_v, dma_sem):
    # ---- one-time load of both tables into single-buffered VMEM scratch (persists) ----
    @pl.when(pl.program_id(0) == 0)
    def _():
        cp0 = pltpu.make_async_copy(emb0_hbm, emb0_v, dma_sem.at[0])
        cp1 = pltpu.make_async_copy(emb1_hbm, emb1_v, dma_sem.at[1])
        cp0.start()
        cp1.start()
        cp0.wait()
        cp1.wait()

    f32 = jnp.float32
    emb0 = emb0_v[...]            # (Vp, Dp) context table; rows >= V are zero (padding row)
    emb1 = emb1_v[...]            # (Vp, Dp) output table; rows >= V are zero
    ints = ints_ref[...]          # (TB, W2+K) int32: [ctx (W2) | word | negs (NEG)]
    flts = flts_ref[...]          # (TB, K+1)  f32:   [lens | valid | neg_mask (NEG)]

    TB = ints.shape[0]
    Vp, Dp = emb0.shape
    K = flts.shape[1] - 1         # 1 + negative
    W2 = ints.shape[1] - K        # 2 * window

    lens = flts[:, 0:1]           # (TB, 1)
    valid = flts[:, 1:2]          # (TB, 1)  1.0 for real batch rows, 0.0 for pad rows

    # ---- CBOW context sum: counts built column-by-column (2-D compares only), 1 MXU matmul ----
    col = jax.lax.broadcasted_iota(jnp.int32, (TB, Vp), 1)
    counts = (ints[:, 0:1] == col).astype(f32)
    for w in range(1, W2):
        counts = counts + (ints[:, w:w + 1] == col).astype(f32)
    # pad index (== V or == Vp) either hits a zero table row or matches no column -> adds 0
    c_sum = jnp.dot(counts, emb0, preferred_element_type=f32)        # (TB, Dp)
    c_mean = c_sum / lens                                            # CBOWMean

    # ---- [word | negatives] embeddings, k-major: rows [k*TB:(k+1)*TB] hold target k ----
    oh_list = [(ints[:, W2 + k:W2 + k + 1] == col).astype(f32) for k in range(K)]
    tgt_oh = jnp.concatenate(oh_list, axis=0)                        # (K*TB, Vp)
    tgt_emb = jnp.dot(tgt_oh, emb1, preferred_element_type=f32)      # (K*TB, Dp)

    # replicate c_mean K times along sublanes (no rep matmul, no integer divide)
    c_rep = jnp.concatenate([c_mean] * K, axis=0)                    # (K*TB, Dp)

    # ---- inner products: elementwise mul + lane reduce over D ----
    ips = jnp.sum(tgt_emb * c_rep, axis=1, keepdims=True)            # (K*TB, 1)
    sig = _my_sigmoid(ips)

    # ---- clamped-sigmoid squared losses (static row-range split: pos = first TB rows) ----
    pos_sig = sig[0:TB]                                              # (TB, 1)
    neg_sig = sig[TB:]                                               # ((K-1)*TB, 1)
    pos_sq = 0.5 * (valid - pos_sig * valid) ** 2                    # valid * 0.5*(1-sig)^2
    neg_mult = jnp.concatenate([flts[:, 2 + k:3 + k] for k in range(K - 1)], axis=0)
    neg_sq = 0.5 * (neg_sig * neg_mult) ** 2                         # pad rows masked to 0

    pos_part = jnp.sum(pos_sq, axis=0, keepdims=True)                # (1, 1)
    neg_part = jnp.sum(neg_sq, axis=0, keepdims=True)                # (1, 1)

    # single lane-dense (8,128) partial block: pos in lanes 0..63, neg in lanes 64..127
    out_ref[...] = jnp.concatenate(
        [jnp.broadcast_to(pos_part, (8, 64)), jnp.broadcast_to(neg_part, (8, 64))], axis=1)


def prepare_tables(emb0, emb1):
    """Hoisted (call once, keep persistent): pad tables to lane/MXU-aligned f32 shapes.

    Row V of the original emb0 (the padding row) is dropped; rows >= V and cols >= D are zero,
    which also realizes the "padding row is zeroed every forward" semantics. If V is an exact
    multiple of 128 (Vp == V) there is no zero row, but index V then matches no iota column in
    the kernel, so pad contexts still contribute exactly 0.
    """
    V, D = emb1.shape
    Vp = max(_round_up(V, 128), 128)
    Dp = max(_round_up(D, 128), 128)
    emb0_p = jnp.pad(emb0[:V].astype(jnp.float32), ((0, Vp - V), (0, Dp - D)))
    emb1_p = jnp.pad(emb1.astype(jnp.float32), ((0, Vp - V), (0, Dp - D)))
    return emb0_p, emb1_p


def _derive_vmem_limit(Vp, Dp, TB, K, W2):
    """Derive vmem_limit_bytes from actual buffer bytes (+headroom); never 100% of v7x VMEM."""
    table_b = 2 * Vp * Dp * 4                                     # single-buffered scratch tables
    io_b = 2 * (TB * (W2 + K) * 4 + TB * (K + 1) * 4) + 2 * 8 * 128 * 4   # double-buffered tiles
    work_b = 4 * TB * ((K + 1) * Vp + (2 * K + 2) * Dp)           # counts/one-hots/gathered rows
    need = table_b + io_b + work_b
    limit = int(need * 1.5) + (8 << 20)                           # headroom for Mosaic scratch
    try:
        cap = int(pltpu.get_tpu_info().vmem_capacity_bytes)
    except Exception:
        cap = 64 << 20                                            # conservative (v7x per-TC)
    return max(min(limit, int(cap * 0.85)), 16 << 20)


@functools.partial(jax.jit, static_argnums=(3, 4))
def cbow_forward(data, emb0_p, emb1_p, window, negative):
    """Pallas-backed CBOW.forward. Takes pre-padded tables; returns (pos_loss, neg_loss)."""
    W2 = 2 * window
    K = 1 + negative
    B = data.shape[0]
    Vp, Dp = emb0_p.shape

    ctx = data[:, 0:W2].astype(jnp.int32)                              # (B, 2W)
    lens = data[:, W2:W2 + 1].astype(jnp.float32)                      # (B, 1)
    word = data[:, W2 + 1:W2 + 2].astype(jnp.int32)                    # (B, 1)
    neg = data[:, W2 + 2:W2 + 2 + negative].astype(jnp.int32)          # (B, NEG)
    mask = data[:, W2 + 2 + negative:W2 + 2 + 2 * negative].astype(jnp.float32)

    # Batch tiling: up to 256 rows per grid step (fewer steps, better MXU M-dim).
    TB = min(256, _round_up(B, 8))
    B_pad = _round_up(B, TB)
    pad_rows = B_pad - B
    ntiles = B_pad // TB

    # Packed int tile: [ctx | word | negs]; padded batch rows filled with Vp (matches nothing,
    # so they gather zero regardless of V vs Vp) and are additionally masked via valid/mask = 0.
    ints = jnp.concatenate([ctx, word, neg], axis=1)                   # (B, W2+K)
    ints_p = jnp.pad(ints, ((0, pad_rows), (0, 0)), constant_values=Vp)

    # Packed float tile: [lens | valid | neg_mask]; pad rows get lens=1 (no /0), valid=0, mask=0.
    lens_p = jnp.pad(lens, ((0, pad_rows), (0, 0)), constant_values=1.0)
    valid = (jnp.arange(B_pad) < B).astype(jnp.float32)[:, None]       # (B_pad, 1)
    mask_p = jnp.pad(mask, ((0, pad_rows), (0, 0)))
    flts_p = jnp.concatenate([lens_p, valid, mask_p], axis=1)          # (B_pad, K+1)

    vmem_limit = _derive_vmem_limit(Vp, Dp, TB, K, W2)

    out = pl.pallas_call(
        cbow_kernel,
        out_shape=jax.ShapeDtypeStruct((ntiles * 8, 128), jnp.float32),
        grid=(ntiles,),
        in_specs=[
            pl.BlockSpec(memory_space=pl.ANY),                 # emb0 table, stays in HBM
            pl.BlockSpec(memory_space=pl.ANY),                 # emb1 table, stays in HBM
            pl.BlockSpec((TB, W2 + K), lambda i: (i, 0)),      # packed int tile
            pl.BlockSpec((TB, K + 1), lambda i: (i, 0)),       # packed float tile
        ],
        out_specs=pl.BlockSpec((8, 128), lambda i: (i, 0)),
        scratch_shapes=[
            pltpu.VMEM((Vp, Dp), jnp.float32),                 # emb0, single-buffered resident
            pltpu.VMEM((Vp, Dp), jnp.float32),                 # emb1, single-buffered resident
            pltpu.SemaphoreType.DMA((2,)),
        ],
        compiler_params=pltpu.CompilerParams(
            dimension_semantics=("arbitrary",),
            vmem_limit_bytes=vmem_limit),
    )(emb0_p, emb1_p, ints_p, flts_p)

    out = out.reshape(ntiles, 8, 128)
    pos_loss = jnp.sum(out[:, 0, 0]) / B
    neg_loss = jnp.sum(out[:, 0, 64]) / B
    return pos_loss, neg_loss


def cbow_reference(data, emb0, emb1, window, negative):
    """Pure-JAX reference mirroring the PyTorch forward (unpadded tables)."""
    W2 = 2 * window
    pad_idx = emb0.shape[0] - 1
    emb0 = emb0.at[pad_idx].set(0.0)
    ctx_idx = data[:, 0:W2]
    ctx_lens = data[:, W2].astype(jnp.float32)
    word_idx = data[:, W2 + 1]
    neg_idx = data[:, W2 + 2:W2 + 2 + negative]
    neg_mask = data[:, W2 + 2 + negative:].astype(jnp.float32)

    c_embs = emb0[ctx_idx]                                   # (B, 2W, D)
    w_embs = emb1[word_idx]                                  # (B, D)
    n_embs = emb1[neg_idx]                                   # (B, NEG, D)
    c_mean = jnp.sum(c_embs, axis=1) / ctx_lens[:, None]     # CBOWMean
    pos_ips = jnp.sum(c_mean * w_embs, axis=1)
    neg_ips = jnp.einsum('bkd,bd->bk', n_embs, c_mean)
    pos_logits = _my_sigmoid(pos_ips)
    neg_logits = _my_sigmoid(neg_ips) * neg_mask
    pos_loss = jnp.mean(0.5 * (1.0 - pos_logits) ** 2)
    neg_loss = jnp.mean(jnp.sum(0.5 * neg_logits ** 2, axis=1))
    return pos_loss, neg_loss


if __name__ == "__main__":
    # small shapes consistent with the module
    VOCAB = 100      # args.vocab_size
    DIM = 64         # args.size
    WINDOW = 3       # args.window  -> 2W = 6
    NEGATIVE = 5     # args.negative
    BATCH = 8

    W2 = 2 * WINDOW
    key = jax.random.PRNGKey(0)
    k1, k2, k3, k4, k5, k6, k7 = jax.random.split(key, 7)

    lens = jax.random.randint(k1, (BATCH,), 1, W2 + 1)                 # in [1, 2W]
    ctx = jax.random.randint(k2, (BATCH, W2), 0, VOCAB)
    pos_j = jnp.arange(W2)[None, :]
    ctx = jnp.where(pos_j < lens[:, None], ctx, VOCAB)                 # pad with pad_idx
    word = jax.random.randint(k3, (BATCH,), 0, VOCAB)
    negs = jax.random.randint(k4, (BATCH, NEGATIVE), 0, VOCAB)
    nmask = jax.random.randint(k5, (BATCH, NEGATIVE), 0, 2)

    data = jnp.concatenate(
        [ctx, lens[:, None], word[:, None], negs, nmask], axis=1).astype(jnp.int32)

    # deterministic parameter init (module shapes: emb0 (V+1, D), emb1 (V, D))
    emb0 = jax.random.uniform(k6, (VOCAB + 1, DIM), jnp.float32, -0.5 / DIM, 0.5 / DIM)
    emb1 = jax.random.uniform(k7, (VOCAB, DIM), jnp.float32, -0.5 / DIM, 0.5 / DIM)

    # hoisted once (persistent padded copies; not re-padded per forward)
    emb0_p, emb1_p = prepare_tables(emb0, emb1)
    jax.block_until_ready((emb0_p, emb1_p))

    pos_loss, neg_loss = cbow_forward(data, emb0_p, emb1_p, WINDOW, NEGATIVE)
    jax.block_until_ready((pos_loss, neg_loss))

    ref_pos, ref_neg = cbow_reference(data, emb0, emb1, WINDOW, NEGATIVE)
    assert jnp.allclose(pos_loss, ref_pos, atol=1e-5, rtol=1e-5), (pos_loss, ref_pos)
    assert jnp.allclose(neg_loss, ref_neg, atol=1e-5, rtol=1e-5), (neg_loss, ref_neg)

    print("KERNEL_OK")
</pallas_src>

<mosaic_0001>
module attributes {stable_mosaic.version = 11 : i64} {
  func.func @cbow_kernel(%arg0: i32, %arg1: memref<128x128xf32, #tpu.memory_space<any>>, %arg2: memref<128x128xf32, #tpu.memory_space<any>>, %arg3: memref<8x12xi32, #tpu.memory_space<vmem>>, %arg4: memref<8x7xf32, #tpu.memory_space<vmem>>, %arg5: memref<8x128xf32, #tpu.memory_space<vmem>>, %arg6: memref<128x128xf32, #tpu.memory_space<vmem>>, %arg7: memref<128x128xf32, #tpu.memory_space<vmem>>, %arg8: memref<2x!tpu.dma_semaphore, #tpu.memory_space<semaphore_mem>>) attributes {dimension_semantics = [#tpu.dimension_semantics<arbitrary>], iteration_bounds = array<i64: 1>, scalar_prefetch = 0 : i64, scratch_operands = 3 : i64, tpu.core_type = #tpu.core_type<tc>, window_params = [{}, {}, {transform_indices = @transform_2, window_bounds = array<i64: 8, 12>}, {transform_indices = @transform_3, window_bounds = array<i64: 8, 7>}, {transform_indices = @transform_4, window_bounds = array<i64: 8, 128>}]} {
    %c0_i32 = arith.constant 0 : i32
    %0 = arith.cmpi eq, %arg0, %c0_i32 : i32
    %1 = arith.extui %0 : i1 to i32
    %c0_i32_0 = arith.constant 0 : i32
    %2 = arith.cmpi ne, %1, %c0_i32_0 : i32
    scf.if %2 {
      %c0_i32_25 = arith.constant 0 : i32
      %130 = tpu.memref_slice %arg8[%c0_i32_25] : memref<2x!tpu.dma_semaphore, #tpu.memory_space<semaphore_mem>> -> memref<1x!tpu.dma_semaphore, #tpu.memory_space<semaphore_mem>>
      %131 = tpu.memref_squeeze %130 : memref<1x!tpu.dma_semaphore, #tpu.memory_space<semaphore_mem>> -> memref<!tpu.dma_semaphore, #tpu.memory_space<semaphore_mem>>
      tpu.enqueue_dma source(%arg1 : memref<128x128xf32, #tpu.memory_space<any>>) target(%arg6 : memref<128x128xf32, #tpu.memory_space<vmem>>) target_semaphore(%131 : memref<!tpu.dma_semaphore, #tpu.memory_space<semaphore_mem>>)
      %c1_i32 = arith.constant 1 : i32
      %132 = tpu.memref_slice %arg8[%c1_i32] : memref<2x!tpu.dma_semaphore, #tpu.memory_space<semaphore_mem>> -> memref<1x!tpu.dma_semaphore, #tpu.memory_space<semaphore_mem>>
      %133 = tpu.memref_squeeze %132 : memref<1x!tpu.dma_semaphore, #tpu.memory_space<semaphore_mem>> -> memref<!tpu.dma_semaphore, #tpu.memory_space<semaphore_mem>>
      tpu.enqueue_dma source(%arg2 : memref<128x128xf32, #tpu.memory_space<any>>) target(%arg7 : memref<128x128xf32, #tpu.memory_space<vmem>>) target_semaphore(%133 : memref<!tpu.dma_semaphore, #tpu.memory_space<semaphore_mem>>)
      %c0_i32_26 = arith.constant 0 : i32
      %134 = tpu.memref_slice %arg8[%c0_i32_26] : memref<2x!tpu.dma_semaphore, #tpu.memory_space<semaphore_mem>> -> memref<1x!tpu.dma_semaphore, #tpu.memory_space<semaphore_mem>>
      %135 = tpu.memref_squeeze %134 : memref<1x!tpu.dma_semaphore, #tpu.memory_space<semaphore_mem>> -> memref<!tpu.dma_semaphore, #tpu.memory_space<semaphore_mem>>
      tpu.wait_dma2 semaphore(%135 : memref<!tpu.dma_semaphore, #tpu.memory_space<semaphore_mem>>) src(%arg1 : memref<128x128xf32, #tpu.memory_space<any>>) dst(%arg6 : memref<128x128xf32, #tpu.memory_space<vmem>>)
      %c1_i32_27 = arith.constant 1 : i32
      %136 = tpu.memref_slice %arg8[%c1_i32_27] : memref<2x!tpu.dma_semaphore, #tpu.memory_space<semaphore_mem>> -> memref<1x!tpu.dma_semaphore, #tpu.memory_space<semaphore_mem>>
      %137 = tpu.memref_squeeze %136 : memref<1x!tpu.dma_semaphore, #tpu.memory_space<semaphore_mem>> -> memref<!tpu.dma_semaphore, #tpu.memory_space<semaphore_mem>>
      tpu.wait_dma2 semaphore(%137 : memref<!tpu.dma_semaphore, #tpu.memory_space<semaphore_mem>>) src(%arg2 : memref<128x128xf32, #tpu.memory_space<any>>) dst(%arg7 : memref<128x128xf32, #tpu.memory_space<vmem>>)
    } else {
    }
    %c0 = arith.constant 0 : index
    %c0_1 = arith.constant 0 : index
    %3 = vector.load %arg6[%c0, %c0_1] : memref<128x128xf32, #tpu.memory_space<vmem>>, vector<128x128xf32>
    %c0_2 = arith.constant 0 : index
    %c0_3 = arith.constant 0 : index
    %4 = vector.load %arg7[%c0_2, %c0_3] : memref<128x128xf32, #tpu.memory_space<vmem>>, vector<128x128xf32>
    %c0_4 = arith.constant 0 : index
    %c0_5 = arith.constant 0 : index
    %5 = vector.load %arg3[%c0_4, %c0_5] : memref<8x12xi32, #tpu.memory_space<vmem>>, vector<8x12xi32>
    %c0_6 = arith.constant 0 : index
    %c0_7 = arith.constant 0 : index
    %6 = vector.load %arg4[%c0_6, %c0_7] : memref<8x7xf32, #tpu.memory_space<vmem>>, vector<8x7xf32>
    %7 = vector.extract_strided_slice %6 {offsets = [0, 0], sizes = [8, 1], strides = [1, 1]} : vector<8x7xf32> to vector<8x1xf32>
    %8 = vector.extract_strided_slice %6 {offsets = [0, 1], sizes = [8, 1], strides = [1, 1]} : vector<8x7xf32> to vector<8x1xf32>
    %9 = tpu.iota {dimensions = array<i32: 1>} : vector<8x128xi32>
    %10 = vector.extract_strided_slice %5 {offsets = [0, 0], sizes = [8, 1], strides = [1, 1]} : vector<8x12xi32> to vector<8x1xi32>
    %11 = vector.broadcast %10 : vector<8x1xi32> to vector<8x128xi32>
    %12 = arith.cmpi eq, %11, %9 : vector<8x128xi32>
    %13 = arith.extui %12 : vector<8x128xi1> to vector<8x128xi32>
    %14 = arith.sitofp %13 : vector<8x128xi32> to vector<8x128xf32>
    %15 = vector.extract_strided_slice %5 {offsets = [0, 1], sizes = [8, 1], strides = [1, 1]} : vector<8x12xi32> to vector<8x1xi32>
    %16 = vector.broadcast %15 : vector<8x1xi32> to vector<8x128xi32>
    %17 = arith.cmpi eq, %16, %9 : vector<8x128xi32>
    %18 = arith.extui %17 : vector<8x128xi1> to vector<8x128xi32>
    %19 = arith.sitofp %18 : vector<8x128xi32> to vector<8x128xf32>
    %20 = arith.addf %14, %19 : vector<8x128xf32>
    %21 = vector.extract_strided_slice %5 {offsets = [0, 2], sizes = [8, 1], strides = [1, 1]} : vector<8x12xi32> to vector<8x1xi32>
    %22 = vector.broadcast %21 : vector<8x1xi32> to vector<8x128xi32>
    %23 = arith.cmpi eq, %22, %9 : vector<8x128xi32>
    %24 = arith.extui %23 : vector<8x128xi1> to vector<8x128xi32>
    %25 = arith.sitofp %24 : vector<8x128xi32> to vector<8x128xf32>
    %26 = arith.addf %20, %25 : vector<8x128xf32>
    %27 = vector.extract_strided_slice %5 {offsets = [0, 3], sizes = [8, 1], strides = [1, 1]} : vector<8x12xi32> to vector<8x1xi32>
    %28 = vector.broadcast %27 : vector<8x1xi32> to vector<8x128xi32>
    %29 = arith.cmpi eq, %28, %9 : vector<8x128xi32>
    %30 = arith.extui %29 : vector<8x128xi1> to vector<8x128xi32>
    %31 = arith.sitofp %30 : vector<8x128xi32> to vector<8x128xf32>
    %32 = arith.addf %26, %31 : vector<8x128xf32>
    %33 = vector.extract_strided_slice %5 {offsets = [0, 4], sizes = [8, 1], strides = [1, 1]} : vector<8x12xi32> to vector<8x1xi32>
    %34 = vector.broadcast %33 : vector<8x1xi32> to vector<8x128xi32>
    %35 = arith.cmpi eq, %34, %9 : vector<8x128xi32>
    %36 = arith.extui %35 : vector<8x128xi1> to vector<8x128xi32>
    %37 = arith.sitofp %36 : vector<8x128xi32> to vector<8x128xf32>
    %38 = arith.addf %32, %37 : vector<8x128xf32>
    %39 = vector.extract_strided_slice %5 {offsets = [0, 5], sizes = [8, 1], strides = [1, 1]} : vector<8x12xi32> to vector<8x1xi32>
    %40 = vector.broadcast %39 : vector<8x1xi32> to vector<8x128xi32>
    %41 = arith.cmpi eq, %40, %9 : vector<8x128xi32>
    %42 = arith.extui %41 : vector<8x128xi1> to vector<8x128xi32>
    %43 = arith.sitofp %42 : vector<8x128xi32> to vector<8x128xf32>
    %44 = arith.addf %38, %43 : vector<8x128xf32>
    %cst = arith.constant dense<0.000000e+00> : vector<8x128xf32>
    %45 = tpu.matmul %44, %3, %cst {dimension_numbers = #tpu.dot_dimension_numbers<[1], [0], [0], [1], [0, 0, 1, 1], [], []>} : vector<8x128xf32>, vector<128x128xf32>, vector<8x128xf32> -> vector<8x128xf32>
    %46 = vector.broadcast %7 : vector<8x1xf32> to vector<8x128xf32>
    %47 = arith.divf %45, %46 : vector<8x128xf32>
    %48 = vector.extract_strided_slice %5 {offsets = [0, 6], sizes = [8, 1], strides = [1, 1]} : vector<8x12xi32> to vector<8x1xi32>
    %49 = vector.broadcast %48 : vector<8x1xi32> to vector<8x128xi32>
    %50 = arith.cmpi eq, %49, %9 : vector<8x128xi32>
    %51 = arith.extui %50 : vector<8x128xi1> to vector<8x128xi32>
    %52 = arith.sitofp %51 : vector<8x128xi32> to vector<8x128xf32>
    %53 = vector.extract_strided_slice %5 {offsets = [0, 7], sizes = [8, 1], strides = [1, 1]} : vector<8x12xi32> to vector<8x1xi32>
    %54 = vector.broadcast %53 : vector<8x1xi32> to vector<8x128xi32>
    %55 = arith.cmpi eq, %54, %9 : vector<8x128xi32>
    %56 = arith.extui %55 : vector<8x128xi1> to vector<8x128xi32>
    %57 = arith.sitofp %56 : vector<8x128xi32> to vector<8x128xf32>
    %58 = vector.extract_strided_slice %5 {offsets = [0, 8], sizes = [8, 1], strides = [1, 1]} : vector<8x12xi32> to vector<8x1xi32>
    %59 = vector.broadcast %58 : vector<8x1xi32> to vector<8x128xi32>
    %60 = arith.cmpi eq, %59, %9 : vector<8x128xi32>
    %61 = arith.extui %60 : vector<8x128xi1> to vector<8x128xi32>
    %62 = arith.sitofp %61 : vector<8x128xi32> to vector<8x128xf32>
    %63 = vector.extract_strided_slice %5 {offsets = [0, 9], sizes = [8, 1], strides = [1, 1]} : vector<8x12xi32> to vector<8x1xi32>
    %64 = vector.broadcast %63 : vector<8x1xi32> to vector<8x128xi32>
    %65 = arith.cmpi eq, %64, %9 : vector<8x128xi32>
    %66 = arith.extui %65 : vector<8x128xi1> to vector<8x128xi32>
    %67 = arith.sitofp %66 : vector<8x128xi32> to vector<8x128xf32>
    %68 = vector.extract_strided_slice %5 {offsets = [0, 10], sizes = [8, 1], strides = [1, 1]} : vector<8x12xi32> to vector<8x1xi32>
    %69 = vector.broadcast %68 : vector<8x1xi32> to vector<8x128xi32>
    %70 = arith.cmpi eq, %69, %9 : vector<8x128xi32>
    %71 = arith.extui %70 : vector<8x128xi1> to vector<8x128xi32>
    %72 = arith.sitofp %71 : vector<8x128xi32> to vector<8x128xf32>
    %73 = vector.extract_strided_slice %5 {offsets = [0, 11], sizes = [8, 1], strides = [1, 1]} : vector<8x12xi32> to vector<8x1xi32>
    %74 = vector.broadcast %73 : vector<8x1xi32> to vector<8x128xi32>
    %75 = arith.cmpi eq, %74, %9 : vector<8x128xi32>
    %76 = arith.extui %75 : vector<8x128xi1> to vector<8x128xi32>
    %77 = arith.sitofp %76 : vector<8x128xi32> to vector<8x128xf32>
    %78 = tpu.concatenate %52, %57, %62, %67, %72, %77 in 0 : vector<8x128xf32>, vector<8x128xf32>, vector<8x128xf32>, vector<8x128xf32>, vector<8x128xf32>, vector<8x128xf32> -> vector<48x128xf32>
    %cst_8 = arith.constant dense<0.000000e+00> : vector<48x128xf32>
    %79 = tpu.matmul %78, %4, %cst_8 {dimension_numbers = #tpu.dot_dimension_numbers<[1], [0], [0], [1], [0, 0, 1, 1], [], []>} : vector<48x128xf32>, vector<128x128xf32>, vector<48x128xf32> -> vector<48x128xf32>
    %80 = tpu.concatenate %47, %47, %47, %47, %47, %47 in 0 : vector<8x128xf32>, vector<8x128xf32>, vector<8x128xf32>, vector<8x128xf32>, vector<8x128xf32>, vector<8x128xf32> -> vector<48x128xf32>
    %81 = arith.mulf %79, %80 : vector<48x128xf32>
    %cst_9 = arith.constant dense<0.000000e+00> : vector<48xf32>
    %82 = vector.multi_reduction <add>, %81, %cst_9 [1] : vector<48x128xf32> to vector<48xf32>
    %83 = vector.shape_cast %82 : vector<48xf32> to vector<48x1xf32>
    %cst_10 = arith.constant -3.000000e+01 : f32
    %cst_11 = arith.constant 3.000000e+01 : f32
    %84 = vector.broadcast %cst_10 : f32 to vector<48x1xf32>
    %85 = arith.maximumf %84, %83 : vector<48x1xf32>
    %86 = vector.broadcast %cst_11 : f32 to vector<48x1xf32>
    %87 = arith.minimumf %86, %85 : vector<48x1xf32>
    %cst_12 = arith.constant 0.000000e+00 : f32
    %88 = vector.broadcast %cst_12 : f32 to vector<48x1xf32>
    %89 = arith.subf %88, %87 : vector<48x1xf32>
    %90 = math.exp %89 : vector<48x1xf32>
    %cst_13 = arith.constant 1.000000e+00 : f32
    %91 = vector.broadcast %cst_13 : f32 to vector<48x1xf32>
    %92 = arith.addf %91, %90 : vector<48x1xf32>
    %cst_14 = arith.constant 1.000000e+00 : f32
    %93 = vector.broadcast %cst_14 : f32 to vector<48x1xf32>
    %94 = arith.divf %93, %92 : vector<48x1xf32>
    %cst_15 = arith.constant 6.000000e+00 : f32
    %95 = vector.broadcast %cst_15 : f32 to vector<48x1xf32>
    %96 = arith.cmpf ogt, %83, %95 : vector<48x1xf32>
    %cst_16 = arith.constant 1.000000e+00 : f32
    %97 = vector.broadcast %cst_16 : f32 to vector<48x1xf32>
    %98 = arith.select %96, %97, %94 : vector<48x1xi1>, vector<48x1xf32>
    %cst_17 = arith.constant -6.000000e+00 : f32
    %99 = vector.broadcast %cst_17 : f32 to vector<48x1xf32>
    %100 = arith.cmpf ogt, %83, %99 : vector<48x1xf32>
    %cst_18 = arith.constant 0.000000e+00 : f32
    %101 = vector.broadcast %cst_18 : f32 to vector<48x1xf32>
    %102 = arith.select %100, %98, %101 : vector<48x1xi1>, vector<48x1xf32>
    %103 = vector.extract_strided_slice %102 {offsets = [0, 0], sizes = [8, 1], strides = [1, 1]} : vector<48x1xf32> to vector<8x1xf32>
    %104 = vector.extract_strided_slice %102 {offsets = [8, 0], sizes = [40, 1], strides = [1, 1]} : vector<48x1xf32> to vector<40x1xf32>
    %105 = arith.mulf %103, %8 : vector<8x1xf32>
    %106 = arith.subf %8, %105 : vector<8x1xf32>
    %107 = arith.mulf %106, %106 : vector<8x1xf32>
    %cst_19 = arith.constant 5.000000e-01 : f32
    %108 = vector.broadcast %cst_19 : f32 to vector<8x1xf32>
    %109 = arith.mulf %108, %107 : vector<8x1xf32>
    %110 = vector.extract_strided_slice %6 {offsets = [0, 2], sizes = [8, 1], strides = [1, 1]} : vector<8x7xf32> to vector<8x1xf32>
    %111 = vector.extract_strided_slice %6 {offsets = [0, 3], sizes = [8, 1], strides = [1, 1]} : vector<8x7xf32> to vector<8x1xf32>
    %112 = vector.extract_strided_slice %6 {offsets = [0, 4], sizes = [8, 1], strides = [1, 1]} : vector<8x7xf32> to vector<8x1xf32>
    %113 = vector.extract_strided_slice %6 {offsets = [0, 5], sizes = [8, 1], strides = [1, 1]} : vector<8x7xf32> to vector<8x1xf32>
    %114 = vector.extract_strided_slice %6 {offsets = [0, 6], sizes = [8, 1], strides = [1, 1]} : vector<8x7xf32> to vector<8x1xf32>
    %115 = tpu.concatenate %110, %111, %112, %113, %114 in 0 : vector<8x1xf32>, vector<8x1xf32>, vector<8x1xf32>, vector<8x1xf32>, vector<8x1xf32> -> vector<40x1xf32>
    %116 = arith.mulf %104, %115 : vector<40x1xf32>
    %117 = arith.mulf %116, %116 : vector<40x1xf32>
    %cst_20 = arith.constant 5.000000e-01 : f32
    %118 = vector.broadcast %cst_20 : f32 to vector<40x1xf32>
    %119 = arith.mulf %118, %117 : vector<40x1xf32>
    %cst_21 = arith.constant dense<0.000000e+00> : vector<1xf32>
    %120 = vector.multi_reduction <add>, %109, %cst_21 [0] : vector<8x1xf32> to vector<1xf32>
    %121 = vector.shape_cast %120 : vector<1xf32> to vector<1x1xf32>
    %cst_22 = arith.constant dense<0.000000e+00> : vector<1xf32>
    %122 = vector.multi_reduction <add>, %119, %cst_22 [0] : vector<40x1xf32> to vector<1xf32>
    %123 = vector.shape_cast %122 : vector<1xf32> to vector<1x1xf32>
    %124 = vector.shape_cast %121 : vector<1x1xf32> to vector<1x1xf32>
    %125 = vector.broadcast %124 : vector<1x1xf32> to vector<8x64xf32>
    %126 = vector.shape_cast %123 : vector<1x1xf32> to vector<1x1xf32>
    %127 = vector.broadcast %126 : vector<1x1xf32> to vector<8x64xf32>
    %128 = tpu.concatenate %125, %127 in 1 : vector<8x64xf32>, vector<8x64xf32> -> vector<8x128xf32>
    %c0_23 = arith.constant 0 : index
    %c0_24 = arith.constant 0 : index
    %129 = vector.load %arg5[%c0_23, %c0_24] : memref<8x128xf32, #tpu.memory_space<vmem>>, vector<8x128xf32>
    tpu.vector_store %arg5[%c0_23, %c0_24], %128 {strides = array<i32>} : memref<8x128xf32, #tpu.memory_space<vmem>>, vector<8x128xf32>,
    return
  }
  func.func @transform_2(%arg0: i32) -> (i32, i32) {
    %c0_i32 = arith.constant 0 : i32
    %c0_i32_0 = arith.constant 0 : i32
    return %arg0, %c0_i32 : i32, i32
  }
  func.func @transform_3(%arg0: i32) -> (i32, i32) {
    %c0_i32 = arith.constant 0 : i32
    %c0_i32_0 = arith.constant 0 : i32
    return %arg0, %c0_i32 : i32, i32
  }
  func.func @transform_4(%arg0: i32) -> (i32, i32) {
    %c0_i32 = arith.constant 0 : i32
    %c0_i32_0 = arith.constant 0 : i32
    return %arg0, %c0_i32 : i32, i32
  }
}

</mosaic_0001>

<bundles_post_ra>
// kernel: cbow_forward.1
= control target key start
LH: loop header
LB: loop body
LE: loop exit
PB: predicated region body
PF: predicated region fallthrough
CT: control target
= control target key end

     0   :  { %s662_s18 = smov [#allocation2]   ;;  %s663_s23 = smov [#allocation3]   ;;  %s880_s0 = inlined_call_operand.hbm [shape: f32[128,128], index: 0, kind: input, shape index: {}]   ;;  %s881_s2 = inlined_call_operand.vmem [shape: s32[8,12], index: 2, kind: input, shape index: {}]   ;;  %s882_s3 = inlined_call_operand.vmem [shape: f32[8,7], index: 3, kind: input, shape index: {}]   ;;  %s883_s4 = inlined_call_operand.vmem [shape: f32[8,128], index: 4, kind: output, shape index: {}]   ;;  %s884_s1 = inlined_call_operand.hbm [shape: f32[128,128], index: 1, kind: input, shape index: {}]  }
   0x1   :  { %s24_s17 = sshll.u32 %s880_s0, 4  ;;  %s26_s19 = sshll.u32 %s662_s18, 4  ;;  %s25_s17 = int_to_ptr.hbm [resolvable:$true] %s24_s17  ;;  %s27_s19 = int_to_ptr.vmem [resolvable:$true] %s26_s19 }
   0x2   :  { %29 = dma.hbm_to_vmem [thread:$0]  %s25_s17, 2048, %s27_s19, [#allocation4] }
   0x3   :  { %s38_s22 = sshll.u32 %s884_s1, 4  ;;  %s40_s24 = sshll.u32 %s663_s23, 4  ;;  %s39_s22 = int_to_ptr.hbm [resolvable:$true] %s38_s22  ;;  %s41_s24 = int_to_ptr.vmem [resolvable:$true] %s40_s24 }
   0x4   :  { %43 = dma.hbm_to_vmem [thread:$0]  %s39_s22, 2048, %s41_s24, [#allocation4 + $0x1] }
   0x5   :  { %658 = dma.done.wait [#allocation4], 2048 }
   0x6   :  { %659 = vsyncadd [#allocation4], 4294965248 }
   0x7   :  { %660 = dma.done.wait [#allocation4 + $0x1], 2048 }
   0x8   :  { %661 = vsyncadd [#allocation4 + $0x1], 4294965248  ;;  %v664_v0 = vmov 0   ;;  %v665_v1 = vmov 9   ;;  %v666_v2 = vmov 2   ;;  %v718_v3 = vld [vmem:[%s881_s2] sm:$0xff]  ;;  %v83_v44 = vlaneseq }
   0x9   :  { %570 = vset.pattern.permute.xlu1 %v664_v0  ;;  %568 = vset.pattern.permute.xlu0 %v665_v1  ;;  %v80_v4 = vld [vmem:[#allocation3 + $0x78] sm:$0xff]  ;;  %v79_v5 = vld [vmem:[#allocation3 + $0x70] sm:$0xff]  ;;  %v78_v6 = vld [vmem:[#allocation3 + $0x68] sm:$0xff]  ;;  %v667_v7 = vmov 1   ;;  %v668_v8 = vmov 7   ;;  %v669_v10 = vmov 3  }
   0xa   :  { %572 = vset.pattern.permute.xlu2 %v666_v2  ;;  %86 = vperm.xlu1 %570, %v718_v3   ;;  %v77_v9 = vld [vmem:[#allocation3 + $0x60] sm:$0xff]  ;;  %v76_v11 = vld [vmem:[#allocation3 + $0x58] sm:$0xff]  ;;  %v75_v12 = vld [vmem:[#allocation3 + $0x50] sm:$0xff]  ;;  %v670_v14 = vmov 10   ;;  %v671_v15 = vmov 8   ;;  %v672_v17 = vmov 4  }
   0xb   :  { %185 = vperm.xlu0 %568, %v718_v3   ;;  %99 = vperm.xlu2 %572, %v718_v3   ;;  %v74_v13 = vld [vmem:[#allocation3 + $0x48] sm:$0xff]  ;;  %v73_v16 = vld [vmem:[#allocation3 + $0x40] sm:$0xff]  ;;  %v72_v18 = vld [vmem:[#allocation3 + $0x38] sm:$0xff]  ;;  %v673_v19 = vmov 5   ;;  %v674_v20 = vmov 11   ;;  %v675_v21 = vmov 6  }
   0xc   :  { %517 = vmatpush.msra.mxu3 %v80_v4  ;;  %516 = vmatpush.msra.mxu2 %v80_v4  ;;  %v71_v22 = vld [vmem:[#allocation3 + $0x30] sm:$0xff]  ;;  %v64_v23 = vld [vmem:[#allocation2 + $0x78] sm:$0xff]  ;;  %v70_v24 = vld [vmem:[#allocation3 + $0x28] sm:$0xff]  ;;  %v84_v47 = vand.u32 127, %v83_v44  ;;  %v676_v50 = vmov 1.0   ;;  %v677_v55 = vmov 0.0  }
   0xd   :  { %202 = vmatpush.msra.mxu1 %v80_v4  ;;  %126 = vmatpush.msra.mxu0 %v64_v23  ;;  %v63_v25 = vld [vmem:[#allocation2 + $0x70] sm:$0xff]  ;;  %v69_v26 = vld [vmem:[#allocation3 + $0x20] sm:$0xff]  ;;  %v62_v27 = vld [vmem:[#allocation2 + $0x68] sm:$0xff]  ;;  %s679_s26 = smov 127   ;;  %s680_s27 = smov 125  }
   0xe   :  { %519 = vmatpush.msra.mxu3 %v79_v5  ;;  %518 = vmatpush.msra.mxu2 %v79_v5  ;;  %v68_v28 = vld [vmem:[#allocation3 + $0x18] sm:$0xff]  ;;  %v61_v29 = vld [vmem:[#allocation2 + $0x60] sm:$0xff]  ;;  %v67_v30 = vld [vmem:[#allocation3 + $0x10] sm:$0xff]  ;;  %s681_s28 = smov 124  }
   0xf   :  { %203 = vmatpush.msra.mxu1 %v79_v5  ;;  %127 = vmatpush.msra.mxu0 %v63_v25  ;;  %v60_v31 = vld [vmem:[#allocation2 + $0x58] sm:$0xff]  ;;  %v66_v32 = vld [vmem:[#allocation3 + $0x8] sm:$0xff]  ;;  %v59_v33 = vld [vmem:[#allocation2 + $0x50] sm:$0xff] }
  0x10   :  { %521 = vmatpush.msra.mxu3 %v78_v6  ;;  %520 = vmatpush.msra.mxu2 %v78_v6  ;;  %v65_v34 = vld [vmem:[#allocation3] sm:$0xff]  ;;  %v58_v35 = vld [vmem:[#allocation2 + $0x48] sm:$0xff]  ;;  %v56_v37 = vld [vmem:[#allocation2 + $0x38] sm:$0xff] }
  0x11   :  { %204 = vmatpush.msra.mxu1 %v78_v6  ;;  %128 = vmatpush.msra.mxu0 %v62_v27  ;;  %v57_v36 = vld [vmem:[#allocation2 + $0x40] sm:$0xff]  ;;  %v55_v38 = vld [vmem:[#allocation2 + $0x30] sm:$0xff]  ;;  %v54_v39 = vld [vmem:[#allocation2 + $0x28] sm:$0xff] }
  0x12   :  { %571 = vset.pattern.permute.xlu1 %v667_v7  ;;  %523 = vmatpush.msra.mxu3 %v77_v9  ;;  %v53_v40 = vld [vmem:[#allocation2 + $0x20] sm:$0xff]  ;;  %v52_v41 = vld [vmem:[#allocation2 + $0x18] sm:$0xff]  ;;  %v51_v43 = vld [vmem:[#allocation2 + $0x10] sm:$0xff] }
  0x13   :  { %569 = vset.pattern.permute.xlu0 %v668_v8  ;;  %92 = vperm.xlu1 %571, %v718_v3   ;;  %v50_v45 = vld [vmem:[#allocation2 + $0x8] sm:$0xff]  ;;  %v49_v46 = vld [vmem:[#allocation2] sm:$0xff] }
  0x14   :  { %173 = vperm.xlu0 %569, %v718_v3   ;;  %573 = vset.pattern.permute.xlu2 %v669_v10  ;;  %v739_v52 = vld [vmem:[%s882_s3] sm:$0xff]  ;;  %s678_s3 = smov 126  }
  0x15   :  { %106 = vperm.xlu2 %573, %v718_v3   ;;  %522 = vmatpush.msra.mxu2 %v77_v9 }
  0x16   :  { %525 = vmatpush.msra.mxu3 %v76_v11  ;;  %205 = vmatpush.msra.mxu1 %v77_v9 }
  0x17   :  { %524 = vmatpush.msra.mxu2 %v76_v11  ;;  %129 = vmatpush.msra.mxu0 %v61_v29 }
  0x18   :  { %527 = vmatpush.msra.mxu3 %v75_v12  ;;  %206 = vmatpush.msra.mxu1 %v76_v11 }
  0x19   :  { %526 = vmatpush.msra.mxu2 %v75_v12  ;;  %130 = vmatpush.msra.mxu0 %v60_v31 }
  0x1a   :  { %529 = vmatpush.msra.mxu3 %v74_v13  ;;  %207 = vmatpush.msra.mxu1 %v75_v12 }
  0x1b   :  { %574 = vset.pattern.permute.xlu1 %v670_v14  ;;  %528 = vmatpush.msra.mxu2 %v74_v13 }
  0x1c   :  { %576 = vset.pattern.permute.xlu0 %v671_v15  ;;  %191 = vperm.xlu1 %574, %v718_v3  }
  0x1d   :  { %179 = vperm.xlu0 %576, %v718_v3   ;;  %575 = vset.pattern.permute.xlu2 %v672_v17 }
  0x1e   :  { %113 = vperm.xlu2 %575, %v718_v3   ;;  %531 = vmatpush.msra.mxu3 %v73_v16 }
  0x1f   :  { %530 = vmatpush.msra.mxu2 %v73_v16  ;;  %208 = vmatpush.msra.mxu1 %v74_v13 }
  0x20   :  { %533 = vmatpush.msra.mxu3 %v72_v18  ;;  %131 = vmatpush.msra.mxu0 %v59_v33 }
  0x21   :  { %532 = vmatpush.msra.mxu2 %v72_v18  ;;  %209 = vmatpush.msra.mxu1 %v73_v16 }
  0x22   :  { %535 = vmatpush.msra.mxu3 %v71_v22  ;;  %132 = vmatpush.msra.mxu0 %v58_v35 }
  0x23   :  { %210 = vmatpush.msra.mxu1 %v72_v18  ;;  %534 = vmatpush.msra.mxu2 %v71_v22 }
  0x24   :  { %577 = vset.pattern.permute.xlu1 %v673_v19  ;;  %537 = vmatpush.msra.mxu3 %v70_v24 }
  0x25   :  { %120 = vperm.xlu1 %577, %v718_v3   ;;  %583 = vset.pattern.permute.xlu0 %v666_v2 }
  0x26   :  { %578 = vset.pattern.permute.xlu2 %v674_v20  ;;  %211 = vmatpush.msra.mxu1 %v71_v22 }
  0x27   :  { %197 = vperm.xlu2 %578, %v718_v3   ;;  %536 = vmatpush.msra.mxu2 %v70_v24 }
  0x28   :  { %212 = vmatpush.msra.mxu1 %v70_v24  ;;  %539 = vmatpush.msra.mxu3 %v69_v26 }
  0x29   :  { %538 = vmatpush.msra.mxu2 %v69_v26  ;;  %133 = vmatpush.msra.mxu0 %v57_v36 }
  0x2a   :  { %213 = vmatpush.msra.mxu1 %v69_v26  ;;  %541 = vmatpush.msra.mxu3 %v68_v28 }
  0x2b   :  { %540 = vmatpush.msra.mxu2 %v68_v28  ;;  %134 = vmatpush.msra.mxu0 %v56_v37 }
  0x2c   :  { %214 = vmatpush.msra.mxu1 %v68_v28  ;;  %543 = vmatpush.msra.mxu3 %v67_v30 }
  0x2d   :  { %579 = vset.pattern.permute.xlu1 %v675_v21  ;;  %542 = vmatpush.msra.mxu2 %v67_v30 }
  0x2e   :  { %167 = vperm.xlu1 %579, %v718_v3   ;;  %215 = vmatpush.msra.mxu1 %v67_v30 }
  0x2f   :  { %580 = vset.pattern.permute.xlu2 %v664_v0  ;;  %545 = vmatpush.msra.mxu3 %v66_v32 }
  0x30   :  { %544 = vmatpush.msra.mxu2 %v66_v32  ;;  %216 = vmatpush.msra.mxu1 %v66_v32 }
  0x31   :  { %547 = vmatpush.msra.mxu3 %v65_v34  ;;  %135 = vmatpush.msra.mxu0 %v55_v38 }
  0x32   :  { %546 = vmatpush.msra.mxu2 %v65_v34  ;;  %217 = vmatpush.msra.mxu1 %v65_v34 }
  0x33   :  { %136 = vmatpush.msra.mxu0 %v54_v39  ;;  %148 = vperm.xlu2 %580, %v739_v52  }
  0x35   :  { %137 = vmatpush.msra.mxu0 %v53_v40 }
  0x36   :  { %582 = vset.pattern.permute.xlu1 %v666_v2 }
  0x37   :  { %138 = vmatpush.msra.mxu0 %v52_v41 }
  0x39   :  { %139 = vmatpush.msra.mxu0 %v51_v43 }
  0x3b   :  { %140 = vmatpush.msra.mxu0 %v50_v45  ;;  %581 = vset.pattern.permute.xlu2 %v667_v7 }
  0x3d   :  { %141 = vmatpush.msra.mxu0 %v49_v46 }
  0x65   :  { %v100_v42 = vpop.permute.xlu2 %99 }
  0x66   :  { %vm101_vm4 = vcmp.eq.s32.totalorder %v100_v42, %v84_v47 }
  0x67   :  { %v492_v62 = vsel %vm101_vm4, 1.0, %v677_v55 }
  0x6f   :  { %v107_v51 = vpop.permute.xlu2 %106 }
  0x70   :  { %vm108_vm5 = vcmp.eq.s32.totalorder %v107_v51, %v84_v47 }
  0x71   :  { %v493_v0 = vsel %vm108_vm5, 1.0, %v677_v55 }
  0x78   :  { %v114_v57 = vpop.permute.xlu2 %113 }
  0x79   :  { %vm115_vm8 = vcmp.eq.s32.totalorder %v114_v57, %v84_v47 }
  0x7a   :  { %v494_v3 = vsel %vm115_vm8, 1.0, %v677_v55 }
  0x7c   :  { %v87_v48 = vpop.permute.xlu1 %86 }
  0x7d   :  { %v186_v49 = vpop.permute.xlu0 %185  ;;  %vm88_vm3 = vcmp.eq.s32.totalorder %v87_v48, %v84_v47 }
  0x7e   :  { %vm187_vm0 = vcmp.eq.s32.totalorder %v186_v49, %v84_v47  ;;  %v490_v58 = vsel %vm88_vm3, 1.0, %v677_v55 }
  0x7f   :  { %505 = vmatmul.msk.f32.vlgmr.msra.gmra.mxu3 %vm187_vm0, %v676_v50 }
  0x81   :  { %v198_v1 = vpop.permute.xlu2 %197 }
  0x82   :  { %vm199_vm9 = vcmp.eq.s32.totalorder %v198_v1, %v84_v47 }
  0x85   :  { %v93_v53 = vpop.permute.xlu1 %92 }
  0x86   :  { %v174_v54 = vpop.permute.xlu0 %173  ;;  %vm94_vm1 = vcmp.eq.s32.totalorder %v93_v53, %v84_v47 }
  0x87   :  { %vm175_vm2 = vcmp.eq.s32.totalorder %v174_v54, %v84_v47  ;;  %v491_v56 = vsel %vm94_vm1, 1.0, %v677_v55 }
  0x88   :  { %503 = vmatmul.msk.f32.vlgmr.msra.gmra.mxu2 %vm175_vm2, %v676_v50  ;;  %v97_v59 = vadd.f32 %v491_v56, %v490_v58 }
  0x8a   :  { %v104_v63 = vadd.f32 %v492_v62, %v97_v59 }
  0x8c   :  { %v111_v2 = vadd.f32 %v493_v0, %v104_v63 }
  0x8d   :  { %v149_v9 = vpop.permute.xlu2 %148 }
  0x8e   :  { %v192_v60 = vpop.permute.xlu1 %191  ;;  %v118_v5 = vadd.f32 %v494_v3, %v111_v2  ;;  %584 = vrcp.f32 %v149_v9  ;;  %vm156_vm12 = vweird.f32 %v149_v9  ;;  %v162_v16 = vand.u32 2147483648, %v149_v9 }
  0x8f   :  { %v180_v61 = vpop.permute.xlu0 %179  ;;  %vm193_vm6 = vcmp.eq.s32.totalorder %v192_v60, %v84_v47  ;;  %v160_v18 = vand.u32 2147483647, %v149_v9 }
  0x90   :  { %vm181_vm7 = vcmp.eq.s32.totalorder %v180_v61, %v84_v47  ;;  %506 = vmatmul.msk.f32.gmra.mxu3 %vm193_vm6, %v676_v50  ;;  %v163_v19 = vor.u32 1.1754944e-38, %v162_v16 }
  0x91   :  { %504 = vmatmul.msk.f32.gmra.mxu2 %vm181_vm7, %v676_v50  ;;  %vm161_vm15 = vcmp.eq.f32.partialorder %v160_v18, 8.507059e+37 }
  0x94   :  { %v585_v10 = vpop.eup %584 }
  0x95   :  { %v152_v11 = vmul.f32 %v585_v10, %v149_v9  ;;  %vm157_vm13 = vweird.f32 %v585_v10 }
  0x96   :  { %vm158_vm14 = vmor %vm156_vm12, %vm157_vm13 }
  0x97   :  { %v121_v4 = vpop.permute.xlu1 %120  ;;  %v153_v12 = vsub.f32 1.0, %v152_v11 }
  0x98   :  { %vm122_vm10 = vcmp.eq.s32.totalorder %v121_v4, %v84_v47  ;;  %507 = vmatmul.msk.f32.gmra.mxu3 %vm199_vm9, %v676_v50 }
  0x99   :  { %v495_v6 = vsel %vm122_vm10, 1.0, %v677_v55  ;;  %v154_v14 = vmul.f32 %v585_v10, %v153_v12 }
  0x9a   :  { %v125_v7 = vadd.f32 %v495_v6, %v118_v5 }
  0x9b   :  { %v155_v17 = vadd.f32 %v585_v10, %v154_v14 }
  0x9c   :  { %142 = vmatmul.f32.vlgmr.msra.gmra.mxu0 %v125_v7 }
  0x9d   :  { %v159_v20 = vsel %vm158_vm14, %v585_v10, %v155_v17 }
  0x9e   :  { %v164_v23 = vsel %vm161_vm15, %v163_v19, %v159_v20 }
  0xa0   :  { %v168_v8 = vpop.permute.xlu1 %167 }
  0xa1   :  { %vm169_vm11 = vcmp.eq.s32.totalorder %v168_v8, %v84_v47 }
  0xa2   :  { %502 = vmatmul.msk.f32.vlgmr.msra.gmra.mxu1 %vm169_vm11, %v676_v50 }
 0x102   :  { %v228_v13 = vpop.f32.mrf.mxu3 }
 0x10b   :  { %v222_v15 = vpop.f32.mrf.mxu2 }
 0x113   :  { %v231_v21 = vpop.f32.mrf.mxu3 }
 0x114   :  { %v225_v24 = vpop.f32.mrf.mxu2 }
 0x119   :  { %v143_v22 = vpop.f32.mrf.mxu0 }
 0x11a   :  { %v165_v25 = vmul.f32 %v164_v23, %v143_v22 }
 0x11b   :  { %v234_v29 = vpop.f32.mrf.mxu3 }
 0x11c   :  { %v239_v26 = vmul.f32 %v225_v24, %v165_v25  ;;  %v240_v27 = vmul.f32 %v228_v13, %v165_v25  ;;  %v238_v28 = vmul.f32 %v222_v15, %v165_v25  ;;  %v242_v31 = vmul.f32 %v234_v29, %v165_v25 }
 0x11d   :  { %v241_v32 = vmul.f32 %v231_v21, %v165_v25 }
 0x11e   :  { %249 = vadd.xlane.f32.xlu2 %v240_v27  ;;  %247 = vadd.xlane.f32.xlu1 %v239_v26 }
 0x11f   :  { %245 = vadd.xlane.f32.xlu0 %v238_v28  ;;  %v219_v30 = vpop.f32.mrf.mxu1 }
 0x120   :  { %v237_v33 = vmul.f32 %v219_v30, %v165_v25 }
 0x126   :  { %251 = vadd.xlane.f32.xlu2 %v241_v32  ;;  %253 = vadd.xlane.f32.xlu1 %v242_v31 }
 0x127   :  { %243 = vadd.xlane.f32.xlu0 %v237_v33 }
 0x13b   :  { %412 = vrot.lane.b32.xlu0 %v739_v52, %s678_s3 }
 0x13e   :  { %409 = vrot.lane.b32.xlu2 %v739_v52, %s679_s26 }
 0x13f   :  { %415 = vrot.lane.b32.xlu1 %v739_v52, %s680_s27 }
 0x143   :  { %418 = vrot.lane.b32.xlu0 %v739_v52, %s681_s28 }
 0x191   :  { %v747_v34 = vpop.xlane.xlu2 %249  ;;  %v749_v35 = vpop.xlane.xlu1 %247 }
 0x192   :  { %v511_v36 = vclamps-f32 %v747_v34, 30.0  ;;  %v510_v37 = vclamps-f32 %v749_v35, 30.0  ;;  %v753_v38 = vpop.xlane.xlu0 %245  ;;  %vm383_vm4 = vcmp.gt.f32.partialorder %v749_v35, 6.0  ;;  %vm384_vm6 = vcmp.gt.f32.partialorder %v747_v34, 6.0 }
 0x193   :  { %v509_v39 = vclamps-f32 %v753_v38, 30.0 }
 0x194   :  { %v270_v40 = vsub.f32 0.0, %v511_v36  ;;  %v269_v41 = vsub.f32 0.0, %v510_v37 }
 0x195   :  { %v268_v42 = vsub.f32 0.0, %v509_v39 }
 0x196   :  { %v279_v43 = vmul.f32 1.442695, %v270_v40  ;;  %v277_v44 = vmul.f32 1.442695, %v269_v41 }
 0x197   :  { %v275_v45 = vmul.f32 1.442695, %v268_v42 }
 0x198   :  { %586 = vpow2.f32 %v279_v43 }
 0x199   :  { %588 = vpow2.f32 %v277_v44  ;;  %v756_v46 = vpop.xlane.xlu2 %251  ;;  %v758_v47 = vpop.xlane.xlu1 %253 }
 0x19a   :  { %590 = vpow2.f32 %v275_v45  ;;  %v512_v48 = vclamps-f32 %v756_v46, 30.0  ;;  %v513_v49 = vclamps-f32 %v758_v47, 30.0  ;;  %v762_v50 = vpop.xlane.xlu0 %243 }
 0x19b   :  { %v508_v51 = vclamps-f32 %v762_v50, 30.0 }
 0x19c   :  { %v271_v53 = vsub.f32 0.0, %v512_v48  ;;  %v272_v54 = vsub.f32 0.0, %v513_v49 }
 0x19d   :  { %v267_v55 = vsub.f32 0.0, %v508_v51 }
 0x19e   :  { %v587_v56 = vpop.eup %586  ;;  %v281_v57 = vmul.f32 1.442695, %v271_v53  ;;  %v283_v62 = vmul.f32 1.442695, %v272_v54 }
 0x19f   :  { %v589_v58 = vpop.eup %588  ;;  %v288_v59 = vadd.f32 1.0, %v587_v56  ;;  %v273_v0 = vmul.f32 1.442695, %v267_v55 }
 0x1a0   :  { %v591_v60 = vpop.eup %590  ;;  %v287_v61 = vadd.f32 1.0, %v589_v58  ;;  %592 = vpow2.f32 %v281_v57 }
 0x1a1   :  { %594 = vrcp.f32 %v288_v59  ;;  %v286_v63 = vadd.f32 1.0, %v591_v60  ;;  %v345_v4 = vand.u32 2147483647, %v288_v59  ;;  %vm341_vm0 = vweird.f32 %v288_v59  ;;  %v410_v51 = vpop.permute.xlu2 %409 }
 0x1a2   :  { %596 = vrcp.f32 %v287_v61  ;;  %v330_v1 = vand.u32 2147483647, %v287_v61  ;;  %v332_v3 = vand.u32 2147483648, %v287_v61  ;;  %vm326_vm2 = vweird.f32 %v287_v61 }
 0x1a3   :  { %598 = vrcp.f32 %v286_v63  ;;  %vm311_vm1 = vweird.f32 %v286_v63  ;;  %v315_v8 = vand.u32 2147483647, %v286_v63  ;;  %v317_v11 = vand.u32 2147483648, %v286_v63 }
 0x1a4   :  { %600 = vpow2.f32 %v283_v62  ;;  %vm771_vm3 = vcmp.eq.f32.partialorder %v330_v1, 8.507059e+37  ;;  %v333_v16 = vor.u32 1.1754944e-38, %v332_v3  ;;  %vm776_vm5 = vcmp.eq.f32.partialorder %v345_v4, 8.507059e+37 }
 0x1a5   :  { %602 = vpow2.f32 %v273_v0  ;;  %v347_v22 = vand.u32 2147483648, %v288_v59  ;;  %vm794_vm14 = vcmp.eq.f32.partialorder %v315_v8, 8.507059e+37  ;;  %v318_v32 = vor.u32 1.1754944e-38, %v317_v11 }
 0x1a6   :  { %v593_v2 = vpop.eup %592 }
 0x1a7   :  { %v765_v5 = vpop.eup %594  ;;  %v767_v6 = vadd.f32 1.0, %v593_v2  ;;  %v348_v39 = vor.u32 1.1754944e-38, %v347_v22 }
 0x1a8   :  { %v597_v7 = vpop.eup %596  ;;  %v337_v9 = vmul.f32 %v765_v5, %v288_v59  ;;  %vm342_vm9 = vweird.f32 %v765_v5 }
 0x1a9   :  { %v599_v10 = vpop.eup %598  ;;  %604 = vrcp.f32 %v767_v6  ;;  %v322_v12 = vmul.f32 %v597_v7, %v287_v61  ;;  %v360_v26 = vand.u32 2147483647, %v767_v6  ;;  %vm327_vm12 = vweird.f32 %v597_v7  ;;  %vm803_vm15 = vmor %vm341_vm0, %vm342_vm9 }
 0x1aa   :  { %v601_v14 = vpop.eup %600  ;;  %v307_v15 = vmul.f32 %v599_v10, %v286_v63  ;;  %v338_v17 = vsub.f32 1.0, %v337_v9  ;;  %v362_v28 = vand.u32 2147483648, %v767_v6  ;;  %vm312_vm13 = vweird.f32 %v599_v10  ;;  %vm328_vm11 = vmor %vm326_vm2, %vm327_vm12 }
 0x1ab   :  { %v603_v19 = vpop.eup %602  ;;  %v782_v20 = vadd.f32 1.0, %v601_v14  ;;  %v323_v21 = vsub.f32 1.0, %v322_v12  ;;  %vm356_vm10 = vweird.f32 %v767_v6  ;;  %vm810_vm8 = vcmp.eq.f32.partialorder %v360_v26, 8.507059e+37  ;;  %vm313_vm7 = vmor %vm311_vm1, %vm312_vm13 }
 0x1ac   :  { %v308_v23 = vsub.f32 1.0, %v307_v15  ;;  %v788_v24 = vadd.f32 1.0, %v603_v19  ;;  %v339_v25 = vmul.f32 %v765_v5, %v338_v17  ;;  %vm444_vm0 = vcmask 23568  }
 0x1ad   :  { %606 = vrcp.f32 %v782_v20  ;;  %v324_v27 = vmul.f32 %v597_v7, %v323_v21  ;;  %v363_v48 = vor.u32 1.1754944e-38, %v362_v28  ;;  %vm385_vm2 = vcmp.gt.f32.partialorder %v756_v46, 6.0  ;;  %v413_v60 = vpop.permute.xlu0 %412 }
 0x1ae   :  { %v309_v29 = vmul.f32 %v599_v10, %v308_v23  ;;  %608 = vrcp.f32 %v788_v24  ;;  %v340_v36 = vadd.f32 %v765_v5, %v339_v25  ;;  %v300_v43 = vand.u32 2147483647, %v788_v24 }
 0x1af   :  { %v605_v31 = vpop.eup %604  ;;  %v325_v33 = vadd.f32 %v597_v7, %v324_v27  ;;  %vm397_vm1 = vcmp.gt.f32.partialorder %v756_v46, -6.0  ;;  %vm897_vm9 = vcmp.gt.f32.partialorder %v747_v34, -6.0  ;;  %v302_v4 = vand.u32 2147483648, %v788_v24 }
 0x1b0   :  { %v310_v40 = vadd.f32 %v599_v10, %v309_v29  ;;  %v352_v41 = vmul.f32 %v605_v31, %v767_v6  ;;  %v344_v45 = vsel %vm803_vm15, %v765_v5, %v340_v36  ;;  %vm393_vm12 = vcmp.gt.f32.partialorder %v762_v50, -6.0 }
 0x1b1   :  { %v329_v44 = vsel %vm328_vm11, %v597_v7, %v325_v33  ;;  %v349_v54 = vsel %vm776_vm5, %v348_v39, %v344_v45  ;;  %vm896_vm5 = vcmp.gt.f32.partialorder %v749_v35, -6.0  ;;  %vm371_vm11 = vweird.f32 %v782_v20  ;;  %v416_v18 = vpop.permute.xlu1 %415 }
 0x1b2   :  { %v314_v49 = vsel %vm313_vm7, %v599_v10, %v310_v40  ;;  %v334_v53 = vsel %vm771_vm3, %v333_v16, %v329_v44  ;;  %v353_v55 = vsub.f32 1.0, %v352_v41  ;;  %v390_v59 = vsel %vm384_vm6, 1.0, %v349_v54 }
 0x1b3   :  { %v607_v56 = vpop.eup %606  ;;  %v319_v57 = vsel %vm794_vm14, %v318_v32, %v314_v49  ;;  %v389_v58 = vsel %vm383_vm4, 1.0, %v334_v53  ;;  %vm357_vm7 = vweird.f32 %v605_v31  ;;  %vm895_vm3 = vcmp.gt.f32.partialorder %v753_v38, 6.0 }
 0x1b4   :  { %v609_v61 = vpop.eup %608  ;;  %v388_v62 = vsel %vm895_vm3, 1.0, %v319_v57  ;;  %v401_v63 = vsel %vm896_vm5, %v389_v58, 0.0  ;;  %v402_v0 = vsel %vm897_vm9, %v390_v59, 0.0  ;;  %v354_v1 = vmul.f32 %v605_v31, %v353_v55  ;;  %vm358_vm13 = vmor %vm356_vm10, %vm357_vm7 }
 0x1b5   :  { %vm898_vm4 = vcmp.gt.f32.partialorder %v753_v38, -6.0  ;;  %v292_v3 = vmul.f32 %v609_v61, %v788_v24  ;;  %v422_v5 = vmul.f32 %v410_v51, %v401_v63  ;;  %vm381_vm6 = vcmp.gt.f32.partialorder %v762_v50, 6.0  ;;  %v419_v42 = vpop.permute.xlu0 %418 }
 0x1b6   :  { %v400_v2 = vsel %vm898_vm4, %v388_v62, 0.0  ;;  %v423_v35 = vmul.f32 %v413_v60, %v402_v0  ;;  %v355_v8 = vadd.f32 %v605_v31, %v354_v1  ;;  %v367_v34 = vmul.f32 %v607_v56, %v782_v20 }
 0x1b7   :  { %v421_v7 = vmul.f32 %v400_v2, %v739_v52  ;;  %v293_v9 = vsub.f32 1.0, %v292_v3  ;;  %v427_v10 = vmul.f32 %v422_v5, %v422_v5  ;;  %v375_v38 = vand.u32 2147483647, %v782_v20 }
 0x1b8   :  { %v377_v11 = vand.u32 2147483648, %v782_v20  ;;  %vm297_vm14 = vweird.f32 %v609_v61  ;;  %v359_v13 = vsel %vm358_vm13, %v605_v31, %v355_v8  ;;  %v368_v14 = vsub.f32 1.0, %v367_v34 }
 0x1b9   :  { %v426_v12 = vmul.f32 %v421_v7, %v421_v7  ;;  %v294_v15 = vmul.f32 %v609_v61, %v293_v9  ;;  %v432_v16 = vmul.f32 0.5, %v427_v10  ;;  %v364_v17 = vsel %vm810_vm8, %v363_v48, %v359_v13 }
 0x1ba   :  { %vm372_vm15 = vweird.f32 %v607_v56  ;;  %v428_v21 = vmul.f32 %v423_v35, %v423_v35  ;;  %v391_v6 = vsel %vm385_vm2, 1.0, %v364_v17  ;;  %v369_v22 = vmul.f32 %v607_v56, %v368_v14 }
 0x1bb   :  { %v431_v19 = vmul.f32 0.5, %v426_v12  ;;  %v295_v23 = vadd.f32 %v609_v61, %v294_v15  ;;  %vm296_vm10 = vweird.f32 %v788_v24  ;;  %v303_v25 = vor.u32 1.1754944e-38, %v302_v4  ;;  %vm373_vm2 = vmor %vm371_vm11, %vm372_vm15 }
 0x1bc   :  { %v403_v26 = vsel %vm397_vm1, %v391_v6, 0.0  ;;  %vm298_vm7 = vmor %vm296_vm10, %vm297_vm14  ;;  %v446_v28 = vsel %vm444_vm0, %v432_v16, 0.0  ;;  %v370_v30 = vadd.f32 %v607_v56, %v369_v22  ;;  %vm301_vm8 = vcmp.eq.f32.partialorder %v300_v43, 8.507059e+37 }
 0x1bd   :  { %v445_v27 = vsel %vm444_vm0, %v431_v19, 0.0  ;;  %v424_v29 = vmul.f32 %v416_v18, %v403_v26  ;;  %v299_v31 = vsel %vm298_vm7, %v609_v61, %v295_v23  ;;  %vm376_vm3 = vcmp.eq.f32.partialorder %v375_v38, 8.507059e+37 }
 0x1be   :  { %v378_v32 = vor.u32 1.1754944e-38, %v377_v11  ;;  %v304_v46 = vsel %vm301_vm8, %v303_v25, %v299_v31  ;;  %v433_v33 = vmul.f32 0.5, %v428_v21  ;;  %v374_v37 = vsel %vm373_vm2, %v607_v56, %v370_v30 }
 0x1bf   :  { %v429_v36 = vmul.f32 %v424_v29, %v424_v29  ;;  %v387_v39 = vsel %vm381_vm6, 1.0, %v304_v46  ;;  %v447_v40 = vadd.f32 %v446_v28, %v445_v27  ;;  %vm386_vm1 = vcmp.gt.f32.partialorder %v758_v47, 6.0 }
 0x1c0   :  { %v379_v41 = vsel %vm376_vm3, %v378_v32, %v374_v37  ;;  %v399_v24 = vsel %vm393_vm12, %v387_v39, 0.0  ;;  %vm398_vm5 = vcmp.gt.f32.partialorder %v758_v47, -6.0  ;;  %v448_v48 = vsel %vm444_vm0, %v433_v33, 0.0 }
 0x1c1   :  { %v434_v43 = vmul.f32 0.5, %v429_v36  ;;  %v392_v20 = vsel %vm386_vm1, 1.0, %v379_v41  ;;  %v405_v44 = vmul.f32 %v399_v24, %v739_v52  ;;  %v449_v54 = vadd.f32 %v448_v48, %v447_v40 }
 0x1c2   :  { %v404_v45 = vsel %vm398_vm5, %v392_v20, 0.0  ;;  %vm436_vm9 = vcmask 15368   ;;  %vm470_vm11 = vcmask 523264  }
 0x1c3   :  { %v450_v49 = vsel %vm444_vm0, %v434_v43, 0.0  ;;  %v425_v51 = vmul.f32 %v419_v42, %v404_v45  ;;  %v406_v53 = vsub.f32 %v739_v52, %v405_v44 }
 0x1c4   :  { %v451_v57 = vadd.f32 %v450_v49, %v449_v54 }
 0x1c5   :  { %v430_v55 = vmul.f32 %v425_v51, %v425_v51  ;;  %v407_v56 = vmul.f32 %v406_v53, %v406_v53 }
 0x1c7   :  { %v435_v50 = vmul.f32 0.5, %v430_v55  ;;  %v408_v58 = vmul.f32 0.5, %v407_v56 }
 0x1c9   :  { %v452_v59 = vsel %vm444_vm0, %v435_v50, 0.0  ;;  %v437_v60 = vsel %vm436_vm9, %v408_v58, 0.0 }
 0x1ca   :  { %v453_v47 = vadd.f32 %v452_v59, %v451_v57  ;;  %v438_v61 = vrot.slane %v437_v60, 4 }
 0x1cc   :  { %v454_v62 = vrot.slane %v453_v47, 4  ;;  %v439_v63 = vadd.f32 %v438_v61, %v437_v60 }
 0x1ce   :  { %v455_v0 = vadd.f32 %v454_v62, %v453_v47  ;;  %v440_v1 = vrot.slane %v439_v63, 2 }
 0x1d0   :  { %v456_v2 = vrot.slane %v455_v0, 2  ;;  %v441_v3 = vadd.f32 %v440_v1, %v439_v63 }
 0x1d2   :  { %v457_v4 = vadd.f32 %v456_v2, %v455_v0  ;;  %v442_v52 = vrot.slane %v441_v3, 1 }
 0x1d4   :  { %v458_v5 = vrot.slane %v457_v4, 1  ;;  %v443_v7 = vadd.f32 %v442_v52, %v441_v3 }
 0x1d6   :  { %v459_v35 = vadd.f32 %v458_v5, %v457_v4  ;;  %462 = vperm.xlu2 %581, %v443_v7  }
 0x1d8   :  { %467 = vperm.xlu1 %582, %v459_v35  }
 0x230   :  { %v463_v8 = vpop.permute.xlu2 %462 }
 0x24a   :  { %v468_v34 = vpop.permute.xlu1 %467 }
 0x24b   :  { %v471_v9 = vsel %vm470_vm11, %v463_v8, %v468_v34 }
 0x24c   :  { %472 = vst [vmem:[%s883_s4] sm:$0xff] %v471_v9 }
 0x24d   :  { %477 = vsyncmov [#allocation4] }
 0x250   :  { %s478_s5 = vpop.sfrf %477 }
 0x251   :  { %p514_p0 = scmp.ne.s32.totalorder %s478_s5, 0 }
 0x253   :  { %482 = shalt.err (%p514_p0)  }
 0x254   :  { %484 = vsyncmov [#allocation4 + $0x1] }
 0x257   :  { %s485_s6 = vpop.sfrf %484 }
 0x258   :  { %p515_p1 = scmp.ne.s32.totalorder %s485_s6, 0 }
 0x25a   :  { %489 = shalt.err (%p515_p1)  }

</bundles_post_ra>
